<compile_context>
chip_gen: v6e
topology: v6e:2x2x1
jax: 0.10.0
libtpu: 0.0.40
codegen_flags: <defaults>
</compile_context>

<pallas_src>
import functools

import jax
import jax.numpy as jnp
from jax.experimental import pallas as pl
from jax.experimental.pallas import tpu as pltpu


def _round_up(x, m):
    return -(-x // m) * m


def _round_down(x, m):
    return (x // m) * m


def _bn_rows_kernel(p_ref, x_ref, o_ref, *, compute_dtype):
    # p_ref: (tm, 2) f32 -- col 0 = scale, col 1 = effective bias, per row (= per channel).
    # x_ref/o_ref: (tm, tl) tiles with the spatial (H*W) axis on lanes.
    p = p_ref[...].astype(compute_dtype)
    y = x_ref[...].astype(compute_dtype) * p[:, 0:1] + p[:, 1:2]
    o_ref[...] = y.astype(o_ref.dtype)


def _bn_flat_kernel(p_ref, x_ref, o_ref, *, compute_dtype):
    # p_ref: (2, tl) f32 -- row 0 = scale, row 1 = effective bias, per lane element.
    # x_ref/o_ref: (tm, tl) tiles with the (C*H*W) axis on lanes.
    p = p_ref[...].astype(compute_dtype)
    y = x_ref[...].astype(compute_dtype) * p[0:1, :] + p[1:2, :]
    o_ref[...] = y.astype(o_ref.dtype)


def _vmem_capacity_bytes():
    # Generation-aware VMEM capacity.  Conservative fallback (v7x = 64 MiB / TC)
    # keeps the tiling safe on every chip if the query is unavailable.
    try:
        cap = int(pltpu.get_tpu_info().vmem_capacity_bytes)
        if cap > 0:
            return cap
    except Exception:
        pass
    return 64 * 1024 * 1024


def frozen_batch_norm_2d(x, weight, bias, running_mean, running_var,
                         eps=1e-5, compute_dtype=jnp.float32,
                         target_block_bytes=None):
    """x: (N, C, H, W).  Params: (C,) arrays (any float dtype).
    Returns (N, C, H, W) in x.dtype, matching FrozenBatchNorm2d.forward."""
    N, C, H, W = x.shape
    HW = H * W
    itemsize = jnp.dtype(x.dtype).itemsize
    pack = max(8, 32 // itemsize)          # sublane packing: 8 f32, 16 bf16, 32 int8

    # --- per-channel scale / effective bias, computed once in f32 -----------
    w32 = weight.astype(jnp.float32)
    b32 = bias.astype(jnp.float32)
    rm32 = running_mean.astype(jnp.float32)
    rv32 = running_var.astype(jnp.float32)
    scale_c = w32 * jax.lax.rsqrt(rv32 + eps)          # (C,)
    bias_c = b32 - rm32 * scale_c                      # (C,)

    # --- generation-aware byte budget ----------------------------------------
    vmem_cap = _vmem_capacity_bytes()
    if target_block_bytes is None:
        # 2x double-buffered input + 2x output blocks (+ params + headroom) must
        # fit VMEM: ~11 MiB blocks on v7x (64 MiB), 16 MiB on v5e/v6e (128 MiB).
        target_block_bytes = min(16 << 20, max(4 << 20, (vmem_cap - (8 << 20)) // 5))
    target_block_bytes = int(target_block_bytes)

    # --- layout choice (both views are free row-major reshapes) --------------
    use_flat = HW < 128
    if use_flat:
        # Small spatial maps: put C*H*W on lanes so stores stay lane-dense.
        R, L = N, C * HW
        params = jnp.stack([jnp.repeat(scale_c, HW),
                            jnp.repeat(bias_c, HW)], axis=0)          # (2, L) f32
        kernel = functools.partial(_bn_flat_kernel, compute_dtype=compute_dtype)
    else:
        R, L = N * C, HW
        params = jnp.stack([jnp.tile(scale_c, N),
                            jnp.tile(bias_c, N)], axis=1)             # (R, 2) f32
        kernel = functools.partial(_bn_rows_kernel, compute_dtype=compute_dtype)

    x2d = x.reshape(R, L)

    # --- lane tile: multiple of 128 within budget; full L only if it fits ----
    if L < 128:
        tl = L                                                        # full dim, always legal
    else:
        max_tl = max(128, _round_down(target_block_bytes // (pack * itemsize), 128))
        tl = L if max_tl >= L else max_tl          # ragged last lane block is masked

    # --- row tile: fill the byte budget, rounded to sublane packing ----------
    tm = max(pack, _round_down(target_block_bytes // (tl * itemsize), pack))
    if tm >= R:
        tm = R                                     # full dim, always legal

    grid_r, grid_l = pl.cdiv(R, tm), pl.cdiv(L, tl)
    # v7x megacore: if the tensor needs >1 block, make sure the row axis has
    # >= 2 blocks so both TensorCores get work (harmless on single-core chips).
    if grid_r * grid_l > 1 and grid_r == 1 and R > pack:
        tm = min(tm, max(pack, _round_up(pl.cdiv(R, 2), pack)))
        grid_r = pl.cdiv(R, tm)

    block_bytes = tm * tl * itemsize
    vmem_limit = int(min(vmem_cap, max(32 << 20, 5 * block_bytes + (2 << 20))))

    if use_flat:
        p_spec = pl.BlockSpec((2, tl), lambda i, j: (0, j))
    else:
        p_spec = pl.BlockSpec((tm, 2), lambda i, j: (i, 0))
    x_spec = pl.BlockSpec((tm, tl), lambda i, j: (i, j))

    out2d = pl.pallas_call(
        kernel,
        out_shape=jax.ShapeDtypeStruct((R, L), x.dtype),
        grid=(grid_r, grid_l),
        in_specs=[p_spec, x_spec],
        out_specs=x_spec,
        compiler_params=pltpu.CompilerParams(
            dimension_semantics=("parallel", "parallel"),
            vmem_limit_bytes=vmem_limit,
        ),
    )(params, x2d)

    return out2d.reshape(N, C, H, W)   # free reshape back to NCHW


def frozen_batch_norm_2d_ref(x, weight, bias, running_mean, running_var, eps=1e-5):
    w = weight.reshape(1, -1, 1, 1).astype(jnp.float32)
    b = bias.reshape(1, -1, 1, 1).astype(jnp.float32)
    rv = running_var.reshape(1, -1, 1, 1).astype(jnp.float32)
    rm = running_mean.reshape(1, -1, 1, 1).astype(jnp.float32)
    scale = w * jax.lax.rsqrt(rv + eps)
    return (x.astype(jnp.float32) * scale + (b - rm * scale)).astype(x.dtype)


if __name__ == "__main__":
    key = jax.random.PRNGKey(0)
    kx, kw, kb, km, kv = jax.random.split(key, 5)
    eps = 1e-5

    def make_params(C):
        weight = jnp.ones((C,), jnp.float32) + 0.1 * jax.random.normal(kw, (C,), jnp.float32)
        bias = jnp.zeros((C,), jnp.float32) + 0.1 * jax.random.normal(kb, (C,), jnp.float32)
        rm = jnp.zeros((C,), jnp.float32) + 0.1 * jax.random.normal(km, (C,), jnp.float32)
        rv = jnp.ones((C,), jnp.float32) + 0.1 * jnp.abs(jax.random.normal(kv, (C,), jnp.float32))
        return weight, bias, rm, rv

    # Case 1: N=2, C=4, H=W=16 (H*W = 256, lane-dense row path), f32.
    N, C, H, W = 2, 4, 16, 16
    x = jax.random.normal(kx, (N, C, H, W), dtype=jnp.float32)
    weight, bias, running_mean, running_var = make_params(C)
    out = jax.block_until_ready(
        frozen_batch_norm_2d(x, weight, bias, running_mean, running_var, eps=eps))
    ref = frozen_batch_norm_2d_ref(x, weight, bias, running_mean, running_var, eps=eps)
    assert out.shape == (N, C, H, W) and out.dtype == x.dtype
    assert jnp.allclose(out, ref, atol=1e-5, rtol=1e-5), "mismatch vs reference (case 1)"

    # Case 2: small, odd spatial size (H*W = 63 < 128) -> flat lane-dense path.
    N2, C2, H2, W2 = 2, 3, 7, 9
    x2 = jax.random.normal(kx, (N2, C2, H2, W2), dtype=jnp.float32)
    w2, b2, rm2, rv2 = make_params(C2)
    out2 = jax.block_until_ready(frozen_batch_norm_2d(x2, w2, b2, rm2, rv2, eps=eps))
    ref2 = frozen_batch_norm_2d_ref(x2, w2, b2, rm2, rv2, eps=eps)
    assert out2.shape == (N2, C2, H2, W2)
    assert jnp.allclose(out2, ref2, atol=1e-5, rtol=1e-5), "mismatch vs reference (case 2)"

    # Case 3: bf16 activations (sublane packing = 16), f32 internal compute.
    N3, C3, H3, W3 = 2, 4, 32, 32
    x3 = jax.random.normal(kx, (N3, C3, H3, W3), dtype=jnp.bfloat16)
    w3, b3, rm3, rv3 = make_params(C3)
    out3 = jax.block_until_ready(frozen_batch_norm_2d(x3, w3, b3, rm3, rv3, eps=eps))
    ref3 = frozen_batch_norm_2d_ref(x3, w3, b3, rm3, rv3, eps=eps)
    assert out3.shape == (N3, C3, H3, W3) and out3.dtype == jnp.bfloat16
    assert jnp.allclose(out3.astype(jnp.float32), ref3.astype(jnp.float32),
                        atol=2e-2, rtol=2e-2), "mismatch vs reference (case 3)"

    print("KERNEL_OK")
</pallas_src>

<mosaic_0001>
module attributes {stable_mosaic.version = 11 : i64} {
  func.func @_bn_rows_kernel(%arg0: i32, %arg1: i32, %arg2: memref<8x2xf32, #tpu.memory_space<vmem>>, %arg3: memref<8x256xf32, #tpu.memory_space<vmem>>, %arg4: memref<8x256xf32, #tpu.memory_space<vmem>>) attributes {dimension_semantics = [#tpu.dimension_semantics<parallel>, #tpu.dimension_semantics<parallel>], iteration_bounds = array<i64: 1, 1>, scalar_prefetch = 0 : i64, scratch_operands = 0 : i64, tpu.core_type = #tpu.core_type<tc>, window_params = [{transform_indices = @transform_0, window_bounds = array<i64: 8, 2>}, {transform_indices = @transform_1, window_bounds = array<i64: 8, 256>}, {transform_indices = @transform_2, window_bounds = array<i64: 8, 256>}]} {
    %c0 = arith.constant 0 : index
    %c0_0 = arith.constant 0 : index
    %0 = vector.load %arg2[%c0, %c0_0] : memref<8x2xf32, #tpu.memory_space<vmem>>, vector<8x2xf32>
    %c0_1 = arith.constant 0 : index
    %c0_2 = arith.constant 0 : index
    %1 = vector.load %arg3[%c0_1, %c0_2] : memref<8x256xf32, #tpu.memory_space<vmem>>, vector<8x256xf32>
    %2 = vector.extract_strided_slice %0 {offsets = [0, 0], sizes = [8, 1], strides = [1, 1]} : vector<8x2xf32> to vector<8x1xf32>
    %3 = vector.broadcast %2 : vector<8x1xf32> to vector<8x256xf32>
    %4 = arith.mulf %1, %3 : vector<8x256xf32>
    %5 = vector.extract_strided_slice %0 {offsets = [0, 1], sizes = [8, 1], strides = [1, 1]} : vector<8x2xf32> to vector<8x1xf32>
    %6 = vector.broadcast %5 : vector<8x1xf32> to vector<8x256xf32>
    %7 = arith.addf %4, %6 : vector<8x256xf32>
    %c0_3 = arith.constant 0 : index
    %c0_4 = arith.constant 0 : index
    %8 = vector.load %arg4[%c0_3, %c0_4] : memref<8x256xf32, #tpu.memory_space<vmem>>, vector<8x256xf32>
    tpu.vector_store %arg4[%c0_3, %c0_4], %7 {strides = array<i32>} : memref<8x256xf32, #tpu.memory_space<vmem>>, vector<8x256xf32>,
    return
  }
  func.func @transform_0(%arg0: i32, %arg1: i32) -> (i32, i32) {
    %c0_i32 = arith.constant 0 : i32
    %c0_i32_0 = arith.constant 0 : i32
    return %arg0, %c0_i32 : i32, i32
  }
  func.func @transform_1(%arg0: i32, %arg1: i32) -> (i32, i32) {
    %c0_i32 = arith.constant 0 : i32
    return %arg0, %arg1 : i32, i32
  }
  func.func @transform_2(%arg0: i32, %arg1: i32) -> (i32, i32) {
    %c0_i32 = arith.constant 0 : i32
    return %arg0, %arg1 : i32, i32
  }
}

</mosaic_0001>

<bundles_post_ra>
// kernel: tpu_custom_call.1
= control target key start
LH: loop header
LB: loop body
LE: loop exit
PB: predicated region body
PF: predicated region fallthrough
CT: control target
= control target key end

     0   :  { %7 = vsyncpa [#allocation3], 0  ;;  %s135_s0 = inlined_call_operand.vmem [shape: f32[8,2], index: 0, kind: input, shape index: {}]   ;;  %s136_s1 = inlined_call_operand.hbm [shape: f32[8,256], index: 1, kind: input, shape index: {}]   ;;  %s137_s2 = inlined_call_operand.hbm [shape: f32[8,256], index: 2, kind: output, shape index: {}]  }
   0x1   :  { %8 = vsyncpa [#allocation4], 0  ;;  %s107_s9 = smov [#allocation2]  }
   0x2   :  { %s17_s10 = sshll.u32 %s107_s9, 4  ;;  %s18_s10 = int_to_ptr.vmem [resolvable:$true] %s17_s10 }
   0x3   :  { %s71_s11 = scalar_lea.vmem %s18_s10, 256  ;;  %p76_p1 = scmp.lt.s32.totalorder %s18_s10, %s18_s10 }
   0x4   :  { %p72_p0 = scmp.ne.s32.totalorder %s18_s10, %s71_s11  ;;  %p77_p2 = scmp.lt.s32.totalorder %s71_s11, %s71_s11 }
   0x6   :  { %p78_p3 = por %p77_p2, %p76_p1 }
   0x8   :  { %p79_p4 = pnand %p78_p3, %p72_p0 }
   0xa   :  { %82 = shalt.err (!%p79_p4)
}
   0xb   :  { %20 = dma.hbm_to_vmem [thread:$0]  %s136_s1, 256, %s18_s10, [#allocation3]  }
   0xc   :  { %103 = dma.done.wait [#allocation3], 256  }
   0xd   :  { %104 = vsyncadd [#allocation3], 4294967040  ;;  %v108_v0 = vmov 0   ;;  %v24_v1 = vld [vmem:[%s135_s0] sm:$0xff]  ;;  %v109_v2 = vmov 1   ;;  %v26_v5 = vld [vmem:[#allocation2 + $0x8] sm:$0xff] }
   0xe   :  { %61 = vset.pattern.permute.xlu0 %v108_v0  ;;  %v25_v4 = vld [vmem:[#allocation2] sm:$0xff]  ;;  %s110_s16 = smov [#allocation5]  }
   0xf   :  { %29 = vperm.xlu0 %61, %v24_v1   ;;  %s48_s17 = sshll.u32 %s110_s16, 4  ;;  %s49_s17 = int_to_ptr.vmem [resolvable:$true] %s48_s17 }
  0x10   :  { %s83_s1 = scalar_lea.vmem %s49_s17, 256  ;;  %p88_p6 = scmp.lt.s32.totalorder %s49_s17, %s49_s17 }
  0x11   :  { %p84_p5 = scmp.ne.s32.totalorder %s49_s17, %s83_s1  ;;  %p89_p7 = scmp.lt.s32.totalorder %s83_s1, %s83_s1 }
  0x13   :  { %62 = vset.pattern.permute.xlu0 %v109_v2  ;;  %p90_p8 = por %p89_p7, %p88_p6 }
  0x14   :  { %35 = vperm.xlu0 %62, %v24_v1  }
  0x15   :  { %p91_p9 = pnand %p90_p8, %p84_p5 }
  0x8a   :  { %v30_v3 = vpop.permute.xlu0 %29 }
  0x8b   :  { %v32_v6 = vmul.f32 %v30_v3, %v25_v4  ;;  %v33_v7 = vmul.f32 %v30_v3, %v26_v5 }
  0x8f   :  { %v36_v8 = vpop.permute.xlu0 %35 }
  0x90   :  { %v38_v9 = vadd.f32 %v36_v8, %v32_v6  ;;  %v39_v10 = vadd.f32 %v36_v8, %v33_v7 }
  0x92   :  { %40 = vst [vmem:[#allocation5] sm:$0xff] %v38_v9  ;;  %41 = vst [vmem:[#allocation5 + $0x8] sm:$0xff] %v39_v10 }
  0x93   :  { %94 = shalt.err (!%p91_p9)
}
  0x94   :  { %51 = dma.vmem_to_hbm [thread:$0]  %s49_s17, 256, %s137_s2, [#allocation4]  }
  0x95   :  { %105 = dma.done.wait [#allocation4], 256  }
  0x96   :  { %106 = vsyncadd [#allocation4], 4294967040 }
  0x97   :  { %55 = vsyncpa [#allocation3], 1 }
  0x98   :  { %56 = vsyncpa [#allocation4], 1 }

</bundles_post_ra>
